<compile_context>
chip_gen: v5e
topology: v5e:2x2
jax: 0.10.0
libtpu: 0.0.40
codegen_flags: <defaults>
</compile_context>

<pallas_src>
import functools

import jax
import jax.numpy as jnp
from jax import lax
from jax.experimental import pallas as pl
from jax.experimental.pallas import tpu as pltpu

LANES = 128
SUBLANES = 8
TARGET_BLOCK_BYTES = 4 * 1024 * 1024   # per-input HBM block per grid step
CHUNK_BYTES = 256 * 1024                # per-input in-kernel chunk (VPU working set)
VMEM_LIMIT_BYTES = 32 * 1024 * 1024     # 2 inputs x 2 buffers x 4 MiB + headroom


def _round_up(x, m):
    return ((x + m - 1) // m) * m


def _default_num_shards():
    # 2 TensorCores per chip on v7x; 1 on v5e/v6e.  The leading "parallel"
    # shard axis only pays off when there is a second core to drive.
    # TODO(synk): switch axis 0 to pltpu.CORE_PARALLEL on v7x if plain
    # "parallel" does not actually shard the grid across the two cores.
    try:
        kind = jax.devices()[0].device_kind.lower()
    except Exception:
        return 1
    return 2 if "v7" in kind else 1


def _rmse_partial_kernel(yhat_ref, y_ref, out_ref, acc_ref, *,
                         tile_rows, chunk_rows, rows_valid, needs_mask):
    """Accumulates sum((yhat - y)^2) into a per-shard (8,128) f32 bucket."""
    shard = pl.program_id(0)
    step = pl.program_id(1)
    steps = pl.num_programs(1)

    # Logical (unclamped) block index.  The index_map clamps the DMA source;
    # the row mask below zeroes any rows this grid step does not logically own
    # (ragged tail of the last real block, or fully out-of-range shard blocks).
    blk = shard * steps + step
    base_row = blk * tile_rows

    @pl.when(step == 0)
    def _():
        acc_ref[...] = jnp.zeros_like(acc_ref)

    num_chunks = tile_rows // chunk_rows

    def body(k, carry):
        off = pl.multiple_of(k * chunk_rows, chunk_rows)
        d = (yhat_ref[pl.ds(off, chunk_rows), :].astype(jnp.float32)
             - y_ref[pl.ds(off, chunk_rows), :].astype(jnp.float32))
        sq = d * d
        if needs_mask:
            r = lax.broadcasted_iota(jnp.int32, (chunk_rows, 1), 0)
            sq = jnp.where(base_row + off + r < rows_valid, sq, 0.0)
        # Fold the chunk's sublane groups into the (8,128) carry: pure VPU adds,
        # fully hidden under the HBM stream.
        return carry + jnp.sum(
            sq.reshape(chunk_rows // SUBLANES, SUBLANES, LANES), axis=0)

    acc_ref[...] += lax.fori_loop(
        0, num_chunks, body,
        jnp.zeros((SUBLANES, LANES), jnp.float32),
        unroll=True)

    @pl.when(step == steps - 1)
    def _():
        out_ref[...] = acc_ref[...]


def rmse_loss(yhat, y, eps=1e-6, num_shards=None):
    assert yhat.shape == y.shape, "yhat and y must have the same shape"
    n_total = yhat.size
    assert n_total > 0, "empty input"

    flat_yhat = jnp.ravel(yhat)
    flat_y = jnp.ravel(y)

    # Minimal padding: only to the next multiple of 128 lanes (<= 127 elems,
    # zero on both inputs -> contributes 0), and only when actually needed.
    padded = _round_up(n_total, LANES)
    if padded != n_total:
        flat_yhat = jnp.pad(flat_yhat, (0, padded - n_total))
        flat_y = jnp.pad(flat_y, (0, padded - n_total))
    rows_total = padded // LANES

    yhat2d = flat_yhat.reshape(rows_total, LANES)
    y2d = flat_y.reshape(rows_total, LANES)

    if num_shards is None:
        num_shards = _default_num_shards()

    itemsizes = (jnp.dtype(yhat.dtype).itemsize, jnp.dtype(y.dtype).itemsize)
    max_item = max(itemsizes)
    min_item = min(itemsizes)
    # Packed sub-32-bit dtypes need 16/32-row multiples on the sublane dim.
    sub_mult = SUBLANES * max(1, 4 // min_item)
    chunk_rows = max(sub_mult,
                     (CHUNK_BYTES // (LANES * max_item)) // sub_mult * sub_mult)
    tile_rows_max = max(chunk_rows,
                        (TARGET_BLOCK_BYTES // (LANES * max_item))
                        // chunk_rows * chunk_rows)

    rows_needed = pl.cdiv(rows_total, num_shards)
    if rows_needed >= tile_rows_max:
        tile_rows = tile_rows_max
    elif rows_needed > chunk_rows:
        tile_rows = _round_up(rows_needed, chunk_rows)
    else:
        tile_rows = _round_up(rows_needed, sub_mult)
        chunk_rows = tile_rows

    blocks_total = pl.cdiv(rows_total, tile_rows)
    num_shards = max(1, min(num_shards, blocks_total))
    steps = pl.cdiv(blocks_total, num_shards)
    needs_mask = (num_shards * steps * tile_rows) > rows_total

    def in_index(c, i):
        # Clamp so the DMA never targets a fully out-of-range block; the kernel
        # masks such steps to zero using the unclamped logical block index.
        return (jnp.minimum(c * steps + i, blocks_total - 1), 0)

    kernel = functools.partial(
        _rmse_partial_kernel,
        tile_rows=tile_rows, chunk_rows=chunk_rows,
        rows_valid=rows_total, needs_mask=needs_mask)

    partials = pl.pallas_call(
        kernel,
        out_shape=jax.ShapeDtypeStruct((num_shards * SUBLANES, LANES),
                                       jnp.float32),
        grid_spec=pltpu.PrefetchScalarGridSpec(
            num_scalar_prefetch=0,
            grid=(num_shards, steps),
            in_specs=[
                pl.BlockSpec((tile_rows, LANES), in_index),
                pl.BlockSpec((tile_rows, LANES), in_index),
            ],
            out_specs=pl.BlockSpec((SUBLANES, LANES), lambda c, i: (c, 0)),
            scratch_shapes=[pltpu.VMEM((SUBLANES, LANES), jnp.float32)],
        ),
        compiler_params=pltpu.CompilerParams(
            dimension_semantics=("parallel", "arbitrary"),
            vmem_limit_bytes=VMEM_LIMIT_BYTES,
        ),
    )(yhat2d, y2d)

    # Finalize: total sum, mean, sqrt(mse + eps)  (matches torch RMSELoss).
    total = jnp.sum(partials)
    return jnp.sqrt(total / jnp.float32(n_total) + jnp.float32(eps))


if __name__ == "__main__":
    key = jax.random.PRNGKey(0)
    k1, k2 = jax.random.split(key)
    # NCHW inputs as a typical regression target pair
    yhat = jax.random.normal(k1, (2, 4, 16, 16), dtype=jnp.float32)
    y = jax.random.normal(k2, (2, 4, 16, 16), dtype=jnp.float32)

    loss = rmse_loss(yhat, y, eps=1e-6)
    loss = jax.block_until_ready(loss)

    # Sanity check against pure-JAX reference
    ref = jnp.sqrt(jnp.mean((yhat - y) ** 2) + 1e-6)
    assert jnp.allclose(loss, ref, rtol=1e-5, atol=1e-6), (loss, ref)

    print("KERNEL_OK")
</pallas_src>

<mosaic_0001>
module attributes {stable_mosaic.version = 11 : i64} {
  func.func @_rmse_partial_kernel(%arg0: i32, %arg1: i32, %arg2: memref<16x128xf32, #tpu.memory_space<vmem>>, %arg3: memref<16x128xf32, #tpu.memory_space<vmem>>, %arg4: memref<8x128xf32, #tpu.memory_space<vmem>>, %arg5: memref<8x128xf32, #tpu.memory_space<vmem>>) attributes {dimension_semantics = [#tpu.dimension_semantics<parallel>, #tpu.dimension_semantics<arbitrary>], iteration_bounds = array<i64: 1, 1>, scalar_prefetch = 0 : i64, scratch_operands = 1 : i64, tpu.core_type = #tpu.core_type<tc>, window_params = [{transform_indices = @transform_0, window_bounds = array<i64: 16, 128>}, {transform_indices = @transform_1, window_bounds = array<i64: 16, 128>}, {transform_indices = @transform_2, window_bounds = array<i64: 8, 128>}]} {
    %c0_i32 = arith.constant 0 : i32
    %0 = arith.cmpi eq, %arg1, %c0_i32 : i32
    %1 = arith.extui %0 : i1 to i32
    %c0_i32_0 = arith.constant 0 : i32
    %2 = arith.cmpi ne, %1, %c0_i32_0 : i32
    scf.if %2 {
      %cst_10 = arith.constant 0.000000e+00 : f32
      %21 = vector.broadcast %cst_10 : f32 to vector<8x128xf32>
      %c0_11 = arith.constant 0 : index
      %c0_12 = arith.constant 0 : index
      %22 = vector.load %arg5[%c0_11, %c0_12] : memref<8x128xf32, #tpu.memory_space<vmem>>, vector<8x128xf32>
      tpu.vector_store %arg5[%c0_11, %c0_12], %21 {strides = array<i32>} : memref<8x128xf32, #tpu.memory_space<vmem>>, vector<8x128xf32>,
    } else {
    }
    %c0 = arith.constant 0 : index
    %c0_1 = arith.constant 0 : index
    %3 = vector.load %arg5[%c0, %c0_1] : memref<8x128xf32, #tpu.memory_space<vmem>>, vector<8x128xf32>
    %cst = arith.constant 0.000000e+00 : f32
    %4 = vector.broadcast %cst : f32 to vector<8x128xf32>
    %c0_i32_2 = arith.constant 0 : i32
    %c16_i32 = arith.constant 16 : i32
    %5 = arith.muli %c0_i32_2, %c16_i32 : i32
    %6 = tpu.assume_multiple %5, 16 : i32
    %7 = arith.index_cast %6 : i32 to index
    %c0_3 = arith.constant 0 : index
    %8 = vector.load %arg2[%7, %c0_3] : memref<16x128xf32, #tpu.memory_space<vmem>>, vector<16x128xf32>
    %9 = arith.index_cast %6 : i32 to index
    %c0_4 = arith.constant 0 : index
    %10 = vector.load %arg3[%9, %c0_4] : memref<16x128xf32, #tpu.memory_space<vmem>>, vector<16x128xf32>
    %11 = arith.subf %8, %10 : vector<16x128xf32>
    %12 = arith.mulf %11, %11 : vector<16x128xf32>
    %13 = vector.shape_cast %12 : vector<16x128xf32> to vector<2x8x128xf32>
    %cst_5 = arith.constant dense<0.000000e+00> : vector<8x128xf32>
    %14 = vector.multi_reduction <add>, %13, %cst_5 [0] : vector<2x8x128xf32> to vector<8x128xf32>
    %15 = arith.addf %4, %14 : vector<8x128xf32>
    %c1_i32 = arith.constant 1 : i32
    %16 = arith.addf %3, %15 : vector<8x128xf32>
    %c0_6 = arith.constant 0 : index
    %c0_7 = arith.constant 0 : index
    %17 = vector.load %arg5[%c0_6, %c0_7] : memref<8x128xf32, #tpu.memory_space<vmem>>, vector<8x128xf32>
    tpu.vector_store %arg5[%c0_6, %c0_7], %16 {strides = array<i32>} : memref<8x128xf32, #tpu.memory_space<vmem>>, vector<8x128xf32>,
    %c0_i32_8 = arith.constant 0 : i32
    %18 = arith.cmpi eq, %arg1, %c0_i32_8 : i32
    %19 = arith.extui %18 : i1 to i32
    %c0_i32_9 = arith.constant 0 : i32
    %20 = arith.cmpi ne, %19, %c0_i32_9 : i32
    scf.if %20 {
      %c0_10 = arith.constant 0 : index
      %c0_11 = arith.constant 0 : index
      %21 = vector.load %arg5[%c0_10, %c0_11] : memref<8x128xf32, #tpu.memory_space<vmem>>, vector<8x128xf32>
      %c0_12 = arith.constant 0 : index
      %c0_13 = arith.constant 0 : index
      %22 = vector.load %arg4[%c0_12, %c0_13] : memref<8x128xf32, #tpu.memory_space<vmem>>, vector<8x128xf32>
      tpu.vector_store %arg4[%c0_12, %c0_13], %21 {strides = array<i32>} : memref<8x128xf32, #tpu.memory_space<vmem>>, vector<8x128xf32>,
    } else {
    }
    return
  }
  func.func @transform_0(%arg0: i32, %arg1: i32) -> (i32, i32) {
    %c1_i32 = arith.constant 1 : i32
    %0 = arith.muli %arg0, %c1_i32 : i32
    %1 = arith.addi %0, %arg1 : i32
    %c0_i32 = arith.constant 0 : i32
    %2 = arith.minsi %1, %c0_i32 : i32
    %c0_i32_0 = arith.constant 0 : i32
    %c0_i32_1 = arith.constant 0 : i32
    return %2, %c0_i32_0 : i32, i32
  }
  func.func @transform_1(%arg0: i32, %arg1: i32) -> (i32, i32) {
    %c1_i32 = arith.constant 1 : i32
    %0 = arith.muli %arg0, %c1_i32 : i32
    %1 = arith.addi %0, %arg1 : i32
    %c0_i32 = arith.constant 0 : i32
    %2 = arith.minsi %1, %c0_i32 : i32
    %c0_i32_0 = arith.constant 0 : i32
    %c0_i32_1 = arith.constant 0 : i32
    return %2, %c0_i32_0 : i32, i32
  }
  func.func @transform_2(%arg0: i32, %arg1: i32) -> (i32, i32) {
    %c0_i32 = arith.constant 0 : i32
    %c0_i32_0 = arith.constant 0 : i32
    return %arg0, %c0_i32 : i32, i32
  }
}

</mosaic_0001>

<bundles_post_ra>
// kernel: tpu_custom_call.1
= control target key start
LH: loop header
LB: loop body
LE: loop exit
PB: predicated region body
PF: predicated region fallthrough
CT: control target
= control target key end

     0   :  { %7 = vsyncpa [#allocation4], 0  ;;  %s221_s0 = inlined_call_operand.hbm [shape: f32[16,128], index: 0, kind: input, shape index: {}]   ;;  %s222_s1 = inlined_call_operand.hbm [shape: f32[16,128], index: 1, kind: input, shape index: {}]   ;;  %s223_s2 = inlined_call_operand.hbm [shape: f32[8,128], index: 2, kind: output, shape index: {}]  }
   0x1   :  { %8 = vsyncpa [#allocation7], 0 }
   0x2   :  { %9 = vsyncpa [#allocation5], 0  ;;  %s20_s11 = sshll.u32 %s221_s0, 4  ;;  %s192_s12 = smov [#allocation3]   ;;  %s21_s11 = int_to_ptr.hbm [resolvable:$true] %s20_s11 }
   0x3   :  { %s22_s13 = sshll.u32 %s192_s12, 4  ;;  %s39_s16 = sshll.u32 %s222_s1, 4  ;;  %s23_s13 = int_to_ptr.vmem [resolvable:$true] %s22_s13  ;;  %s40_s16 = int_to_ptr.hbm [resolvable:$true] %s39_s16 }
   0x4   :  { %s193_s17 = smov 128   ;;  %s194_s18 = smov 8  }
   0x5   :  { %28 = dma.hbm_to_vmem [thread:$0]  %s21_s11, 256, %s23_s13, [#allocation4], %s193_s17, %s193_s17, %s194_s18  }
   0x6   :  { %s195_s19 = smov [#allocation6]  }
   0x7   :  { %s41_s20 = sshll.u32 %s195_s19, 4  ;;  %s42_s20 = int_to_ptr.vmem [resolvable:$true] %s41_s20 }
   0x8   :  { %47 = dma.hbm_to_vmem [thread:$0]  %s40_s16, 256, %s42_s20, [#allocation7], %s193_s17, %s193_s17, %s194_s18  }
   0x9   :  { %186 = dma.done.wait [#allocation4], 256  }
   0xa   :  { %187 = vsyncadd [#allocation4], 4294967040 }
   0xb   :  { %188 = dma.done.wait [#allocation7], 256  }
   0xc   :  { %189 = vsyncadd [#allocation7], 4294967040  ;;  %v70_v0 = vld [vmem:[#allocation3] sm:$0xff]  ;;  %v71_v1 = vld [vmem:[#allocation3 + $0x8] sm:$0xff]  ;;  %s196_s0 = smov [#allocation8]   ;;  %s94_s23 = sshll.u32 %s223_s2, 4  ;;  %s95_s23 = int_to_ptr.hbm [resolvable:$true] %s94_s23 }
   0xd   :  { %v72_v2 = vld [vmem:[#allocation6] sm:$0xff]  ;;  %v73_v3 = vld [vmem:[#allocation6 + $0x8] sm:$0xff]  ;;  %s92_s1 = sshll.u32 %s196_s0, 4  ;;  %s93_s1 = int_to_ptr.vmem [resolvable:$true] %s92_s1 }
   0xe   :  { %v74_v4 = vsub.f32 %v70_v0, %v72_v2  ;;  %v75_v5 = vsub.f32 %v71_v1, %v73_v3 }
  0x10   :  { %v76_v6 = vmul.f32 %v74_v4, %v74_v4  ;;  %v77_v7 = vmul.f32 %v75_v5, %v75_v5 }
  0x12   :  { %v78_v8 = vadd.f32 %v77_v7, %v76_v6 }
  0x14   :  { %86 = vst [vmem:[#allocation8] sm:$0xff] %v78_v8 }
  0x15   :  { %97 = dma.vmem_to_hbm [thread:$0]  %s93_s1, 128, %s95_s23, [#allocation5]  }
  0x16   :  { %190 = dma.done.wait [#allocation5], 128  }
  0x17   :  { %191 = vsyncadd [#allocation5], 4294967168 }
  0x18   :  { %102 = vsyncpa [#allocation4], 1 }
  0x19   :  { %103 = vsyncpa [#allocation7], 1 }
  0x1a   :  { %104 = vsyncpa [#allocation5], 1 }

</bundles_post_ra>
